<compile_context>
chip_gen: v6e
topology: v6e:2x2x1
jax: 0.10.0
libtpu: 0.0.40
codegen_flags: <defaults>
</compile_context>

<pallas_src>
import jax
import jax.numpy as jnp
from jax.experimental import pallas as pl
from jax.experimental.pallas import tpu as pltpu


def _round_up(v, m):
    return ((v + m - 1) // m) * m


def _mlp_kernel(x_ref, w1_ref, b1_ref, w2_ref, b2_ref, w3_ref, b3_ref, o_ref):
    a = o_ref.shape[-1]
    # Layer 1: (TB, F)f32 -> bf16 (free VPU cast) @ (F, 256)bf16 -> f32 acc.
    x = x_ref[...].astype(jnp.bfloat16)
    h1 = jnp.dot(x, w1_ref[...], preferred_element_type=jnp.float32)
    h1 = jnp.maximum(h1 + b1_ref[...], 0.0)
    # Layer 2: (TB, 256)bf16 @ (256, 128)bf16 -> f32 acc, +bias, ReLU.
    h2 = jnp.dot(h1.astype(jnp.bfloat16), w2_ref[...],
                 preferred_element_type=jnp.float32)
    h2 = jnp.maximum(h2 + b2_ref[...], 0.0)
    # Layer 3: (TB, 128)bf16 @ (128, A_pad)bf16 -> f32 acc, +bias.
    out = jnp.dot(h2.astype(jnp.bfloat16), w3_ref[...],
                  preferred_element_type=jnp.float32)
    out = out + b3_ref[...]
    # Store only the real A columns: DMA writeback is (TB, A) instead of
    # (TB, 128) -- same number of vregs stored (masked vst), far less HBM.
    o_ref[...] = out[:, :a].astype(o_ref.dtype)


def prepare_params(params):
    """One-time param prep (hoisted out of the per-call path): bf16 weights,
    f32 biases, hidden-2 / action dims zero-padded to 128 lanes (exact:
    padded rows/cols and bias entries are zero, ReLU(0)=0, padded output
    columns are never stored)."""
    w1, b1 = params["w1"], params["b1"]
    w2, b2 = params["w2"], params["b2"]
    w3, b3 = params["w3"], params["b3"]
    f, h1_dim = w1.shape                       # (F, 256)
    h2_dim = w2.shape[1]                       # 64
    a = w3.shape[1]                            # action dim
    h2_pad = _round_up(max(h2_dim, 128), 128)
    a_pad = _round_up(max(a, 128), 128)

    w1p = w1.astype(jnp.bfloat16)                                   # (F, 256)
    b1p = jnp.reshape(b1, (1, h1_dim)).astype(jnp.float32)
    w2p = jnp.zeros((h1_dim, h2_pad), jnp.bfloat16).at[:, :h2_dim].set(
        w2.astype(jnp.bfloat16))
    b2p = jnp.zeros((1, h2_pad), jnp.float32).at[:, :h2_dim].set(
        jnp.reshape(b2, (1, h2_dim)).astype(jnp.float32))
    w3p = jnp.zeros((h2_pad, a_pad), jnp.bfloat16).at[:h2_dim, :a].set(
        w3.astype(jnp.bfloat16))
    b3p = jnp.zeros((1, a_pad), jnp.float32).at[:, :a].set(
        jnp.reshape(b3, (1, a)).astype(jnp.float32))
    return {"w1": w1p, "b1": b1p, "w2": w2p, "b2": b2p, "w3": w3p, "b3": b3p,
            "in_features": f, "action_dim": a}


def fully_connected_network(x, prepared, *, tb_max=2048):
    """x: (B, *obs_shape) float32. prepared: output of prepare_params()."""
    b = x.shape[0]
    x_flat = x.reshape(b, -1).astype(jnp.float32)    # flatten(start_dim=1)
    f = x_flat.shape[1]
    assert f == prepared["in_features"], "obs features mismatch"

    w1p, b1p = prepared["w1"], prepared["b1"]
    w2p, b2p = prepared["w2"], prepared["b2"]
    w3p, b3p = prepared["w3"], prepared["b3"]
    a = prepared["action_dim"]
    h1_dim = w1p.shape[1]
    h2_pad = w2p.shape[1]
    a_pad = w3p.shape[1]

    # Batch tile: multiple of 16 (bf16 sublane packing), capped at tb_max,
    # and no larger than ~half the batch so large batches always get >= 2
    # grid steps (both v7x TensorCores busy).
    tb_max = max(16, (int(tb_max) // 16) * 16)
    half = _round_up(max(1, -(-b // 2)), 16)
    tb = min(tb_max, half)
    b_pad = _round_up(b, tb)

    # Only pad the batch rows (f32, no cast, no feature padding); a no-op
    # whenever B is already a multiple of the tile.
    if b_pad == b:
        x_in = x_flat
    else:
        x_in = jnp.zeros((b_pad, f), x_flat.dtype).at[:b].set(x_flat)

    grid = (b_pad // tb,)

    flops = 2 * b_pad * (f * h1_dim + h1_dim * h2_pad + h2_pad * a_pad)
    bytes_accessed = (
        b_pad * f * 4                                    # streamed input
        + (w1p.size + w2p.size + w3p.size) * 2           # resident bf16 weights
        + (b1p.size + b2p.size + b3p.size) * 4           # resident f32 biases
        + b_pad * a * 4)                                 # unpadded output

    # Weights / biases: whole-array blocks, constant index_map -> resident.
    resident = lambda arr: pl.BlockSpec(arr.shape, lambda i: (0,) * arr.ndim)

    out = pl.pallas_call(
        _mlp_kernel,
        out_shape=jax.ShapeDtypeStruct((b_pad, a), jnp.float32),
        grid=grid,
        in_specs=[
            # (tb, F): last dim equals the full array dim -> legal, no pad.
            pl.BlockSpec((tb, f), lambda i: (i, 0)),
            resident(w1p), resident(b1p),
            resident(w2p), resident(b2p),
            resident(w3p), resident(b3p),
        ],
        # (tb, A): last dim equals the full array dim -> legal, lane-minimal
        # writeback.
        out_specs=pl.BlockSpec((tb, a), lambda i: (i, 0)),
        compiler_params=pltpu.CompilerParams(
            dimension_semantics=("parallel",)),
        cost_estimate=pl.CostEstimate(flops=flops, transcendentals=0,
                                      bytes_accessed=bytes_accessed),
    )(x_in, w1p, b1p, w2p, b2p, w3p, b3p)

    return out[:b] if b_pad != b else out


def init_params(key, obs_features, action_shape):
    """nn.Linear default init U(-1/sqrt(fan_in), 1/sqrt(fan_in)).
    Weights stored (in_features, out_features) == PyTorch W.T."""
    dims = [(obs_features, 256), (256, 64), (64, action_shape)]
    params = {}
    keys = jax.random.split(key, 2 * len(dims))
    for i, (fan_in, fan_out) in enumerate(dims):
        bound = 1.0 / (fan_in ** 0.5)
        params[f"w{i+1}"] = jax.random.uniform(
            keys[2 * i], (fan_in, fan_out), jnp.float32, -bound, bound)
        params[f"b{i+1}"] = jax.random.uniform(
            keys[2 * i + 1], (1, fan_out), jnp.float32, -bound, bound)
    return params


def reference_forward(x, params):
    h = x.reshape(x.shape[0], -1)
    h = jnp.maximum(h @ params["w1"] + params["b1"], 0.0)
    h = jnp.maximum(h @ params["w2"] + params["b2"], 0.0)
    return h @ params["w3"] + params["b3"]


if __name__ == "__main__":
    key = jax.random.PRNGKey(0)
    k_param, k_x, k_x2 = jax.random.split(key, 3)

    obs_shape = (4, 16)        # obs features = 64 after flatten
    action_shape = 8
    batch = 2

    obs_features = 1
    for d in obs_shape:
        obs_features *= d

    params = init_params(k_param, obs_features, action_shape)
    prepared = prepare_params(params)      # one-time param prep (hoisted)

    # Small-batch check (single grid step, padded batch rows sliced off).
    x = jax.random.normal(k_x, (batch,) + obs_shape, jnp.float32)
    out = jax.block_until_ready(fully_connected_network(x, prepared))
    ref = reference_forward(x, params)
    assert out.shape == (batch, action_shape)
    assert jnp.allclose(out, ref, atol=2e-2, rtol=2e-2), (
        jnp.max(jnp.abs(out - ref)))

    # Larger non-divisible batch: exercises the multi-step grid + batch pad.
    batch2 = 300
    x2 = jax.random.normal(k_x2, (batch2,) + obs_shape, jnp.float32)
    out2 = jax.block_until_ready(fully_connected_network(x2, prepared))
    ref2 = reference_forward(x2, params)
    assert out2.shape == (batch2, action_shape)
    assert jnp.allclose(out2, ref2, atol=2e-2, rtol=2e-2), (
        jnp.max(jnp.abs(out2 - ref2)))

    print("KERNEL_OK")
</pallas_src>

<mosaic_0001>
module attributes {stable_mosaic.version = 11 : i64} {
  func.func @_mlp_kernel(%arg0: i32, %arg1: memref<16x64xf32, #tpu.memory_space<vmem>>, %arg2: memref<64x256xbf16, #tpu.memory_space<vmem>>, %arg3: memref<1x256xf32, #tpu.memory_space<vmem>>, %arg4: memref<256x128xbf16, #tpu.memory_space<vmem>>, %arg5: memref<1x128xf32, #tpu.memory_space<vmem>>, %arg6: memref<128x128xbf16, #tpu.memory_space<vmem>>, %arg7: memref<1x128xf32, #tpu.memory_space<vmem>>, %arg8: memref<16x8xf32, #tpu.memory_space<vmem>>) attributes {dimension_semantics = [#tpu.dimension_semantics<parallel>], iteration_bounds = array<i64: 1>, scalar_prefetch = 0 : i64, scratch_operands = 0 : i64, tpu.core_type = #tpu.core_type<tc>, window_params = [{transform_indices = @transform_0, window_bounds = array<i64: 16, 64>}, {pipeline_mode = #tpu.pipeline_mode<synchronous>, transform_indices = @transform_1, window_bounds = array<i64: 64, 256>}, {pipeline_mode = #tpu.pipeline_mode<synchronous>, transform_indices = @transform_2, window_bounds = array<i64: 1, 256>}, {pipeline_mode = #tpu.pipeline_mode<synchronous>, transform_indices = @transform_3, window_bounds = array<i64: 256, 128>}, {pipeline_mode = #tpu.pipeline_mode<synchronous>, transform_indices = @transform_4, window_bounds = array<i64: 1, 128>}, {pipeline_mode = #tpu.pipeline_mode<synchronous>, transform_indices = @transform_5, window_bounds = array<i64: 128, 128>}, {pipeline_mode = #tpu.pipeline_mode<synchronous>, transform_indices = @transform_6, window_bounds = array<i64: 1, 128>}, {transform_indices = @transform_7, window_bounds = array<i64: 16, 8>}]} {
    %c0 = arith.constant 0 : index
    %c0_0 = arith.constant 0 : index
    %0 = vector.load %arg1[%c0, %c0_0] : memref<16x64xf32, #tpu.memory_space<vmem>>, vector<16x64xf32>
    %1 = arith.truncf %0 : vector<16x64xf32> to vector<16x64xbf16>
    %c0_1 = arith.constant 0 : index
    %c0_2 = arith.constant 0 : index
    %2 = vector.load %arg2[%c0_1, %c0_2] : memref<64x256xbf16, #tpu.memory_space<vmem>>, vector<64x256xbf16>
    %cst = arith.constant dense<0.000000e+00> : vector<16x256xf32>
    %3 = tpu.matmul %1, %2, %cst {dimension_numbers = #tpu.dot_dimension_numbers<[1], [0], [0], [1], [0, 0, 1, 1], [], []>} : vector<16x64xbf16>, vector<64x256xbf16>, vector<16x256xf32> -> vector<16x256xf32>
    %c0_3 = arith.constant 0 : index
    %c0_4 = arith.constant 0 : index
    %4 = vector.load %arg3[%c0_3, %c0_4] : memref<1x256xf32, #tpu.memory_space<vmem>>, vector<1x256xf32>
    %5 = vector.broadcast %4 : vector<1x256xf32> to vector<16x256xf32>
    %6 = arith.addf %3, %5 : vector<16x256xf32>
    %cst_5 = arith.constant 0.000000e+00 : f32
    %7 = vector.broadcast %cst_5 : f32 to vector<16x256xf32>
    %8 = arith.maximumf %6, %7 : vector<16x256xf32>
    %9 = arith.truncf %8 : vector<16x256xf32> to vector<16x256xbf16>
    %c0_6 = arith.constant 0 : index
    %c0_7 = arith.constant 0 : index
    %10 = vector.load %arg4[%c0_6, %c0_7] : memref<256x128xbf16, #tpu.memory_space<vmem>>, vector<256x128xbf16>
    %cst_8 = arith.constant dense<0.000000e+00> : vector<16x128xf32>
    %11 = tpu.matmul %9, %10, %cst_8 {dimension_numbers = #tpu.dot_dimension_numbers<[1], [0], [0], [1], [0, 0, 1, 1], [], []>} : vector<16x256xbf16>, vector<256x128xbf16>, vector<16x128xf32> -> vector<16x128xf32>
    %c0_9 = arith.constant 0 : index
    %c0_10 = arith.constant 0 : index
    %12 = vector.load %arg5[%c0_9, %c0_10] : memref<1x128xf32, #tpu.memory_space<vmem>>, vector<1x128xf32>
    %13 = vector.broadcast %12 : vector<1x128xf32> to vector<16x128xf32>
    %14 = arith.addf %11, %13 : vector<16x128xf32>
    %cst_11 = arith.constant 0.000000e+00 : f32
    %15 = vector.broadcast %cst_11 : f32 to vector<16x128xf32>
    %16 = arith.maximumf %14, %15 : vector<16x128xf32>
    %17 = arith.truncf %16 : vector<16x128xf32> to vector<16x128xbf16>
    %c0_12 = arith.constant 0 : index
    %c0_13 = arith.constant 0 : index
    %18 = vector.load %arg6[%c0_12, %c0_13] : memref<128x128xbf16, #tpu.memory_space<vmem>>, vector<128x128xbf16>
    %cst_14 = arith.constant dense<0.000000e+00> : vector<16x128xf32>
    %19 = tpu.matmul %17, %18, %cst_14 {dimension_numbers = #tpu.dot_dimension_numbers<[1], [0], [0], [1], [0, 0, 1, 1], [], []>} : vector<16x128xbf16>, vector<128x128xbf16>, vector<16x128xf32> -> vector<16x128xf32>
    %c0_15 = arith.constant 0 : index
    %c0_16 = arith.constant 0 : index
    %20 = vector.load %arg7[%c0_15, %c0_16] : memref<1x128xf32, #tpu.memory_space<vmem>>, vector<1x128xf32>
    %21 = vector.broadcast %20 : vector<1x128xf32> to vector<16x128xf32>
    %22 = arith.addf %19, %21 : vector<16x128xf32>
    %23 = vector.extract_strided_slice %22 {offsets = [0, 0], sizes = [16, 8], strides = [1, 1]} : vector<16x128xf32> to vector<16x8xf32>
    %c0_17 = arith.constant 0 : index
    %c0_18 = arith.constant 0 : index
    %24 = vector.load %arg8[%c0_17, %c0_18] : memref<16x8xf32, #tpu.memory_space<vmem>>, vector<16x8xf32>
    tpu.vector_store %arg8[%c0_17, %c0_18], %23 {strides = array<i32>} : memref<16x8xf32, #tpu.memory_space<vmem>>, vector<16x8xf32>,
    return
  }
  func.func @transform_0(%arg0: i32) -> (i32, i32) {
    %c0_i32 = arith.constant 0 : i32
    %c0_i32_0 = arith.constant 0 : i32
    return %arg0, %c0_i32 : i32, i32
  }
  func.func @transform_1(%arg0: i32) -> (i32, i32) {
    %c0_i32 = arith.constant 0 : i32
    %c0_i32_0 = arith.constant 0 : i32
    %c0_i32_1 = arith.constant 0 : i32
    return %c0_i32, %c0_i32_0 : i32, i32
  }
  func.func @transform_2(%arg0: i32) -> (i32, i32) {
    %c0_i32 = arith.constant 0 : i32
    %c0_i32_0 = arith.constant 0 : i32
    %c0_i32_1 = arith.constant 0 : i32
    return %c0_i32, %c0_i32_0 : i32, i32
  }
  func.func @transform_3(%arg0: i32) -> (i32, i32) {
    %c0_i32 = arith.constant 0 : i32
    %c0_i32_0 = arith.constant 0 : i32
    %c0_i32_1 = arith.constant 0 : i32
    return %c0_i32, %c0_i32_0 : i32, i32
  }
  func.func @transform_4(%arg0: i32) -> (i32, i32) {
    %c0_i32 = arith.constant 0 : i32
    %c0_i32_0 = arith.constant 0 : i32
    %c0_i32_1 = arith.constant 0 : i32
    return %c0_i32, %c0_i32_0 : i32, i32
  }
  func.func @transform_5(%arg0: i32) -> (i32, i32) {
    %c0_i32 = arith.constant 0 : i32
    %c0_i32_0 = arith.constant 0 : i32
    %c0_i32_1 = arith.constant 0 : i32
    return %c0_i32, %c0_i32_0 : i32, i32
  }
  func.func @transform_6(%arg0: i32) -> (i32, i32) {
    %c0_i32 = arith.constant 0 : i32
    %c0_i32_0 = arith.constant 0 : i32
    %c0_i32_1 = arith.constant 0 : i32
    return %c0_i32, %c0_i32_0 : i32, i32
  }
  func.func @transform_7(%arg0: i32) -> (i32, i32) {
    %c0_i32 = arith.constant 0 : i32
    %c0_i32_0 = arith.constant 0 : i32
    return %arg0, %c0_i32 : i32, i32
  }
}

</mosaic_0001>

<bundles_post_ra>
// kernel: tpu_custom_call.1
= control target key start
LH: loop header
LB: loop body
LE: loop exit
PB: predicated region body
PF: predicated region fallthrough
CT: control target
= control target key end

     0   :  { %12 = vsyncpa [#allocation3], 0  ;;  %s796_s0 = inlined_call_operand.hbm [shape: f32[16,64], index: 0, kind: input, shape index: {}]   ;;  %s797_s1 = inlined_call_operand.hbm [shape: bf16[64,256], index: 1, kind: input, shape index: {}]   ;;  %s798_s2 = inlined_call_operand.vmem [shape: f32[1,256], index: 2, kind: input, shape index: {}]   ;;  %s799_s3 = inlined_call_operand.hbm [shape: bf16[256,128], index: 3, kind: input, shape index: {}]   ;;  %s800_s4 = inlined_call_operand.vmem [shape: f32[1,128], index: 4, kind: input, shape index: {}]   ;;  %s801_s5 = inlined_call_operand.hbm [shape: bf16[128,128], index: 5, kind: input, shape index: {}]   ;;  %s802_s6 = inlined_call_operand.vmem [shape: f32[1,128], index: 6, kind: input, shape index: {}]   ;;  %s803_s7 = inlined_call_operand.vmem [shape: f32[16,8], index: 7, kind: output, shape index: {}]  }
   0x1   :  { %13 = vsyncpa [#allocation5], 0 }
   0x2   :  { %14 = vsyncpa [#allocation8], 0  ;;  %s718_s24 = smov [#allocation4]   ;;  %s719_s26 = smov [#allocation2]  }
   0x3   :  { %s32_s25 = sshll.u32 %s718_s24, 4  ;;  %s20_s27 = sshll.u32 %s719_s26, 4  ;;  %s33_s25 = int_to_ptr.vmem [resolvable:$true] %s32_s25  ;;  %s21_s27 = int_to_ptr.vmem [resolvable:$true] %s20_s27 }
   0x4   :  { %s640_s28 = scalar_lea.vmem %s33_s25, 1024  ;;  %p645_p1 = scmp.lt.s32.totalorder %s33_s25, %s33_s25 }
   0x5   :  { %p641_p0 = scmp.ne.s32.totalorder %s33_s25, %s640_s28  ;;  %p646_p2 = scmp.lt.s32.totalorder %s640_s28, %s640_s28 }
   0x7   :  { %p647_p3 = por %p646_p2, %p645_p1 }
   0x9   :  { %p648_p4 = pnand %p647_p3, %p641_p0 }
   0xb   :  { %651 = shalt.err (!%p648_p4)
}
   0xc   :  { %s720_s29 = smov 128   ;;  %s721_s30 = smov 8  }
   0xd   :  { %38 = dma.hbm_to_vmem [thread:$0]  %s797_s1, 1024, %s33_s25, [#allocation5], %s720_s29, %s720_s29, %s721_s30  }
   0xe   :  { %s660_s10 = scalar_lea.vmem %s21_s27, 256  ;;  %p665_p6 = scmp.lt.s32.totalorder %s21_s27, %s21_s27 }
   0xf   :  { %p661_p5 = scmp.ne.s32.totalorder %s21_s27, %s660_s10  ;;  %p666_p7 = scmp.lt.s32.totalorder %s660_s10, %s660_s10 }
  0x11   :  { %p667_p8 = por %p666_p7, %p665_p6 }
  0x13   :  { %p668_p9 = pnand %p667_p8, %p661_p5 }
  0x15   :  { %671 = shalt.err (!%p668_p9)
}
  0x16   :  { %26 = dma.hbm_to_vmem [thread:$0]  %s796_s0, 256, %s21_s27, [#allocation3], %s720_s29, %s720_s29, %s721_s30  }
  0x17   :  { %s722_s13 = smov [#allocation6]  }
  0x18   :  { %s46_s14 = sshll.u32 %s722_s13, 4  ;;  %s47_s14 = int_to_ptr.vmem [resolvable:$true] %s46_s14 }
  0x19   :  { %s680_s15 = scalar_lea.vmem %s47_s14, 2048  ;;  %p685_p11 = scmp.lt.s32.totalorder %s47_s14, %s47_s14 }
  0x1a   :  { %p681_p10 = scmp.ne.s32.totalorder %s47_s14, %s680_s15  ;;  %p686_p12 = scmp.lt.s32.totalorder %s680_s15, %s680_s15 }
  0x1c   :  { %p687_p13 = por %p686_p12, %p685_p11 }
  0x1e   :  { %p688_p0 = pnand %p687_p13, %p681_p10 }
  0x20   :  { %691 = shalt.err (!%p688_p0)
}
  0x21   :  { %s723_s1 = smov 64   ;;  %s724_s16 = smov 4  }
  0x22   :  { %52 = dma.hbm_to_vmem [thread:$0]  %s799_s3, 2048, %s47_s14, [#allocation5], %s723_s1, %s723_s1, %s724_s16  }
  0x23   :  { %s725_s19 = smov [#allocation7]  }
  0x24   :  { %s60_s20 = sshll.u32 %s725_s19, 4  ;;  %s61_s20 = int_to_ptr.vmem [resolvable:$true] %s60_s20 }
  0x25   :  { %s700_s0 = scalar_lea.vmem %s61_s20, 1024  ;;  %p705_p2 = scmp.lt.s32.totalorder %s61_s20, %s61_s20 }
  0x26   :  { %p701_p1 = scmp.ne.s32.totalorder %s61_s20, %s700_s0  ;;  %p706_p3 = scmp.lt.s32.totalorder %s700_s0, %s700_s0 }
  0x28   :  { %p707_p4 = por %p706_p3, %p705_p2 }
  0x2a   :  { %p708_p5 = pnand %p707_p4, %p701_p1 }
  0x2c   :  { %711 = shalt.err (!%p708_p5)
}
  0x2d   :  { %66 = dma.hbm_to_vmem [thread:$0]  %s801_s5, 1024, %s61_s20, [#allocation8], %s723_s1, %s723_s1, %s724_s16  }
  0x2e   :  { %712 = dma.done.wait [#allocation3], 256  }
  0x2f   :  { %713 = vsyncadd [#allocation3], 4294967040 }
  0x30   :  { %714 = dma.done.wait [#allocation5], 3072  }
  0x31   :  { %715 = vsyncadd [#allocation5], 4294964224 }
  0x32   :  { %716 = dma.done.wait [#allocation8], 1024  }
  0x33   :  { %717 = vsyncadd [#allocation8], 4294966272  ;;  %v726_v0 = vmov 0   ;;  %v596_v1 = vld [vmem:[#allocation4 + $0x34] ss:$8 sps:$4 sm:$0xff]   ;;  %v612_v14 = vld [vmem:[#allocation6 + $0x68] sm:$0xff]   ;;  %v95_v33 = vlaneseq }
  0x34   :  { %181 = vmatprep.mubr.bf16.mxu0 %v726_v0  ;;  %v598_v2 = vld [vmem:[#allocation4 + $0x30] ss:$8 sps:$4 sm:$0xff]   ;;  %157 = vmatprep.subr.bf16.mxu0 %v596_v1  ;;  %v599_v3 = vld [vmem:[#allocation4 + $0x24] ss:$8 sps:$4 sm:$0xff]   ;;  %v601_v4 = vld [vmem:[#allocation4 + $0x20] ss:$8 sps:$4 sm:$0xff]  }
  0x35   :  { %158 = vmatpush1.bf16.msra.mxu0 %v598_v2  ;;  %v602_v5 = vld [vmem:[#allocation4 + $0x14] ss:$8 sps:$4 sm:$0xff]   ;;  %v604_v6 = vld [vmem:[#allocation4 + $0x10] ss:$8 sps:$4 sm:$0xff]   ;;  %v605_v7 = vld [vmem:[#allocation4 + $0x4] ss:$8 sps:$4 sm:$0xff]  }
  0x36   :  { %159 = vmatprep.subr.bf16.mxu0 %v599_v3  ;;  %v608_v8 = vld [vmem:[#allocation6 + $0x78] sm:$0xff]   ;;  %v610_v10 = vld [vmem:[#allocation6 + $0x70] sm:$0xff]   ;;  %v607_v11 = vld [vmem:[#allocation4] ss:$8 sps:$4 sm:$0xff]   ;;  %vm145_vm0 = vcmask 523264   ;;  %v727_v29 = vmov 0.0  }
  0x37   :  { %v609_v9 = vld [vmem:[#allocation6 + $0x38] sm:$0xff]   ;;  %534 = vmatprep.subr.bf16.mxu1 %v608_v8  ;;  %v82_v12 = vld [vmem:[#allocation2] sm:$0xff]  ;;  %v613_v16 = vld [vmem:[#allocation6 + $0x28] sm:$0xff]   ;;  %v96_v34 = vshrl.u32 %v95_v33, 7  ;;  %vm728_vm1 = vmmov 0   ;;  %vm489_vm2 = vcmask 64512  }
  0x38   :  { %535 = vmatpush3.bf16.msra.mxu1 %v609_v9  ;;  %v611_v13 = vld [vmem:[#allocation6 + $0x30] sm:$0xff]   ;;  %v83_v15 = vld [vmem:[#allocation2 + $0x8] sm:$0xff]  ;;  %v614_v18 = vld [vmem:[#allocation6 + $0x60] sm:$0xff]  }
  0x39   :  { %160 = vmatpush1.bf16.msra.mxu0 %v601_v4  ;;  %536 = vmatprep.subr.bf16.mxu1 %v610_v10  ;;  %v84_v17 = vpack.c.bf16 %v83_v15, %v82_v12  ;;  %v615_v19 = vld [vmem:[#allocation6 + $0x20] sm:$0xff]   ;;  %v616_v20 = vld [vmem:[#allocation6 + $0x58] sm:$0xff]   ;;  %v618_v22 = vld [vmem:[#allocation6 + $0x50] sm:$0xff]   ;;  %v101_v35 = vsub.s32 1, %v96_v34  ;;  %v97_v36 = vsub.s32 0, %v96_v34 }
  0x3a   :  { %161 = vmatprep.subr.bf16.mxu0 %v602_v5  ;;  %v617_v21 = vld [vmem:[#allocation6 + $0x18] sm:$0xff]   ;;  %v619_v23 = vld [vmem:[#allocation6 + $0x10] sm:$0xff]   ;;  %v620_v24 = vld [vmem:[#allocation6 + $0x48] sm:$0xff]  }
  0x3b   :  { %v621_v25 = vld [vmem:[#allocation6 + $0x8] sm:$0xff]   ;;  %v622_v26 = vld [vmem:[#allocation6 + $0x40] sm:$0xff]   ;;  %v624_v28 = vld [vmem:[#allocation7 + $0x38] sm:$0xff]  }
  0x3c   :  { %537 = vmatpush3.bf16.msra.mxu1 %v611_v13  ;;  %v623_v27 = vld [vmem:[#allocation6] sm:$0xff]   ;;  %v625_v30 = vld [vmem:[#allocation7 + $0x30] sm:$0xff]   ;;  %v626_v31 = vld [vmem:[#allocation7 + $0x28] sm:$0xff]  }
  0x3d   :  { %162 = vmatpush1.bf16.msra.mxu0 %v604_v6  ;;  %538 = vmatprep.subr.bf16.mxu1 %v612_v14  ;;  %v627_v32 = vld [vmem:[#allocation7 + $0x20] sm:$0xff]   ;;  %v93_v37 = vld [vmem:[%s798_s2] sm:$0x3]  ;;  %v628_v54 = vld [vmem:[#allocation7 + $0x18] sm:$0xff]  }
  0x3e   :  { %163 = vmatprep.subr.bf16.mxu0 %v605_v7  ;;  %v102_v39 = vrot.slane %v93_v37, %v101_v35  ;;  %v98_v40 = vrot.slane %v93_v37, %v97_v36  ;;  %v629_v55 = vld [vmem:[#allocation7 + $0x10] sm:$0xff]   ;;  %v630_v56 = vld [vmem:[#allocation7 + $0x8] sm:$0xff]   ;;  %v631_v57 = vld [vmem:[#allocation7] sm:$0xff]  }
  0x3f   :  { %v508_v61 = vld [vmem:[%s800_s4] ss:$0 sm:$0xff] }
  0x40   :  { %539 = vmatpush3.bf16.msra.mxu1 %v613_v16  ;;  %v525_v6 = vld [vmem:[%s802_s6] ss:$0 sm:$0xff] }
  0x41   :  { %164 = vmatpush1.bf16.msra.mxu0 %v607_v11  ;;  %540 = vmatprep.subr.bf16.mxu1 %v614_v18 }
  0x42   :  { %565 = vmatprep.subr.bf16.mxu0 %v727_v29 }
  0x44   :  { %507 = vmatmul.mubr.msk.bf16.vlgmr.msra.gmra.mxu0 %vm145_vm0, %v84_v17  ;;  %541 = vmatpush3.bf16.msra.mxu1 %v615_v19 }
  0x45   :  { %542 = vmatprep.subr.bf16.mxu1 %v616_v20  ;;  %566 = vmatpush3.bf16.msra.mxu0 %v624_v28 }
  0x46   :  { %567 = vmatprep.subr.bf16.mxu0 %v727_v29  ;;  %581 = vmatprep.mubr.msk.bf16.mxu0 %vm728_vm1, %v727_v29 }
  0x48   :  { %543 = vmatpush3.bf16.msra.mxu1 %v617_v21 }
  0x49   :  { %544 = vmatprep.subr.bf16.mxu1 %v618_v22  ;;  %568 = vmatpush3.bf16.msra.mxu0 %v625_v30 }
  0x4a   :  { %569 = vmatprep.subr.bf16.mxu0 %v727_v29 }
  0x4c   :  { %545 = vmatpush3.bf16.msra.mxu1 %v619_v23 }
  0x4d   :  { %546 = vmatprep.subr.bf16.mxu1 %v620_v24  ;;  %570 = vmatpush3.bf16.msra.mxu0 %v626_v31 }
  0x4e   :  { %571 = vmatprep.subr.bf16.mxu0 %v727_v29 }
  0x50   :  { %547 = vmatpush3.bf16.msra.mxu1 %v621_v25 }
  0x51   :  { %548 = vmatprep.subr.bf16.mxu1 %v622_v26  ;;  %572 = vmatpush3.bf16.msra.mxu0 %v627_v32 }
  0x52   :  { %573 = vmatprep.subr.bf16.mxu0 %v727_v29 }
  0x54   :  { %549 = vmatpush3.bf16.msra.mxu1 %v623_v27 }
  0x55   :  { %574 = vmatpush3.bf16.msra.mxu0 %v628_v54 }
  0x56   :  { %575 = vmatprep.subr.bf16.mxu0 %v727_v29 }
  0x59   :  { %576 = vmatpush3.bf16.msra.mxu0 %v629_v55 }
  0x5a   :  { %577 = vmatprep.subr.bf16.mxu0 %v727_v29 }
  0x5d   :  { %578 = vmatpush3.bf16.msra.mxu0 %v630_v56 }
  0x5e   :  { %579 = vmatprep.subr.bf16.mxu0 %v727_v29 }
  0x61   :  { %580 = vmatpush3.bf16.msra.mxu0 %v631_v57 }
 0x104   :  { %v183_v38 = vpop.f32.mrf.mxu0 }
 0x105   :  { %v184_v45 = vadd.f32 %v183_v38, %v98_v40 }
 0x106   :  { %v185_v41 = vpop.f32.mrf.mxu0 }
 0x107   :  { %v186_v43 = vadd.f32 %v185_v41, %v102_v39  ;;  %v192_v51 = vmax.f32 %v184_v45, 0.0 }
 0x108   :  { %v187_v42 = vpop.f32.mrf.mxu0 }
 0x109   :  { %v188_v44 = vadd.f32 %v187_v42, %v98_v40  ;;  %v193_v49 = vmax.f32 %v186_v43, 0.0 }
 0x10a   :  { %v189_v46 = vpop.f32.mrf.mxu0 }
 0x10b   :  { %v190_v47 = vadd.f32 %v189_v46, %v102_v39  ;;  %v194_v48 = vmax.f32 %v188_v44, 0.0 }
 0x10d   :  { %v195_v50 = vmax.f32 %v190_v47, 0.0  ;;  %v196_v53 = vpack.c.bf16 %v194_v48, %v192_v51 }
 0x10f   :  { %v197_v52 = vpack.c.bf16 %v195_v50, %v193_v49 }
 0x111   :  { %365 = vmatprep.mubr.bf16.mxu1 %v197_v52 }
 0x112   :  { %366 = vmatmul.mubr.bf16.vlgmr.msra.gmra.mxu1 %v196_v53 }
 0x1d2   :  { %v550_v58 = vpop.f32.mrf.mxu1 }
 0x1d4   :  { %v551_v59 = vpop.f32.mrf.mxu1 }
 0x1d5   :  { %v552_v60 = vadd.f32 %v551_v59, %v550_v58 }
 0x1d6   :  { %v553_v62 = vpop.f32.mrf.mxu1 }
 0x1d7   :  { %v368_v0 = vadd.f32 %v552_v60, %v508_v61 }
 0x1d8   :  { %v554_v63 = vpop.f32.mrf.mxu1 }
 0x1d9   :  { %v555_v1 = vadd.f32 %v554_v63, %v553_v62  ;;  %v374_v3 = vmax.f32 %v368_v0, 0.0 }
 0x1db   :  { %v371_v2 = vadd.f32 %v555_v1, %v508_v61 }
 0x1dd   :  { %v375_v4 = vmax.f32 %v371_v2, 0.0 }
 0x1df   :  { %v376_v5 = vpack.c.bf16 %v375_v4, %v374_v3 }
 0x1e1   :  { %582 = vmatmul.mubr.bf16.vlgmr.msra.gmra.mxu0 %v376_v5 }
 0x2a1   :  { %v482_v7 = vpop.f32.mrf.mxu0 }
 0x2a2   :  { %v483_v8 = vadd.f32 %v525_v6, %v482_v7 }
 0x2a3   :  { %v583_v9 = vpop.f32.mrf.mxu0 }
 0x2a4   :  { %490 = vst.msk [vmem:[%s803_s7] sm:$0xff] %vm489_vm2, %v483_v8 }
 0x2a5   :  { %v485_v10 = vpop.f32.mrf.mxu0 }
 0x2a6   :  { %v486_v11 = vadd.f32 %v525_v6, %v485_v10 }
 0x2a7   :  { %v584_v12 = vpop.f32.mrf.mxu0 }
 0x2a8   :  { %491 = vst.msk [vmem:[%s803_s7 + $0x8] sm:$0xff] %vm489_vm2, %v486_v11 }
 0x2a9   :  { %496 = vsyncpa [#allocation3], 1 }
 0x2aa   :  { %497 = vsyncpa [#allocation5], 1 }
 0x2ab   :  { %498 = vsyncpa [#allocation8], 1 }

</bundles_post_ra>
